<compile_context>
chip_gen: v5e
topology: v5e:2x2
jax: 0.10.0
libtpu: 0.0.40
codegen_flags: <defaults>
</compile_context>

<pallas_src>
import math

import jax
import jax.numpy as jnp
import numpy as np
from jax import lax
from jax.experimental import pallas as pl
from jax.experimental.pallas import tpu as pltpu

GLN_EPS = float(jnp.finfo(jnp.float32).eps)   # module passes eps=torch.finfo(f32).eps
LN_EPS = 1e-6                                 # SpeechBrain LayerNorm(d_model, eps=1e-6)
_MiB = 1024 * 1024


def _layer_norm(v, g, b):
    mu = jnp.mean(v, axis=-1, keepdims=True)
    var = jnp.mean((v - mu) ** 2, axis=-1, keepdims=True)
    return (v - mu) * lax.rsqrt(var + LN_EPS) * g + b


def _round_up(x, m):
    return ((x + m - 1) // m) * m


# ------------------------------ kernel ------------------------------
def make_kernel(nhead, Bblk, L, D, F, mm_dtype, approx_recip=True):
    dh = D // nhead
    M = Bblk * L
    BH = nhead * Bblk

    def kernel(x_ref, wqkv_ref, woh_ref, w1_ref, w2_ref, vec_ref, fin_ref,
               out_ref, x_sc):
        l = pl.program_id(1)

        # first layer of this batch block: load the input into the carry
        @pl.when(l == 0)
        def _init():
            x_sc[...] = x_ref[...].reshape(M, D)

        x = x_sc[...]                              # (M, D) f32 activation carry
        vec = vec_ref[0]                           # (8, P) packed per-layer vectors
        # rows: 0 bqkv(perm,scaled) 1 bo 2 b1 3 b2 4 ln1g 5 ln1b 6 ln2g 7 ln2b

        # ------------------- multi-head self-attention -------------------
        # fused full-width QKV projection; 1/sqrt(dh) folded into Q columns.
        qkv = jnp.dot(x.astype(mm_dtype), wqkv_ref[0],
                      preferred_element_type=jnp.float32) + vec[0, :3 * D]

        # head-major split: columns are pre-ordered per head as [q_h|k_h|v_h],
        # so one stack of nhead contiguous (M, 3*dh) slabs builds the
        # head-major tensor (no per-dh lane slicing, no output concat).
        # TODO(synk): replace with a lane-splitting reshape + (1,0,2)
        # transpose (or pltpu.einshape) once Mosaic lowers those for dh < 128.
        heads = jnp.stack(
            [qkv[:, h * 3 * dh:(h + 1) * 3 * dh] for h in range(nhead)],
            axis=0)                                          # (nhead, M, 3*dh)
        qh = heads[:, :, 0:dh].reshape(BH, L, dh).astype(mm_dtype)
        kh = heads[:, :, dh:2 * dh].reshape(BH, L, dh).astype(mm_dtype)
        vh = heads[:, :, 2 * dh:3 * dh].reshape(BH, L, dh).astype(mm_dtype)

        s = jnp.einsum('bqd,bkd->bqk', qh, kh,
                       preferred_element_type=jnp.float32)   # scale pre-folded
        s = s - jnp.max(s, axis=-1, keepdims=True)
        p = jnp.exp(s)
        denom = jnp.sum(p, axis=-1, keepdims=True)
        ctx = jnp.einsum('bqk,bkd->bqd', p.astype(mm_dtype), vh,
                         preferred_element_type=jnp.float32)
        if approx_recip:
            ctx = ctx * pl.reciprocal(denom, approx=True)    # EUP, after p@v
        else:
            ctx = ctx / denom

        # output projection with head-major weights: sum over heads (VPU adds),
        # no lane-dim concatenate.
        ctx = ctx.reshape(nhead, M, dh).astype(mm_dtype)
        attn = jnp.einsum('hmd,hde->hme', ctx, woh_ref[0],
                          preferred_element_type=jnp.float32)
        attn = jnp.sum(attn, axis=0) + vec[1, :D]

        # add & norm (post-norm)
        x = _layer_norm(x + attn, vec[4, :D], vec[5, :D])

        # ------------------- positionwise feed-forward -------------------
        h1 = jnp.dot(x.astype(mm_dtype), w1_ref[0],
                     preferred_element_type=jnp.float32) + vec[2, :F]
        h1 = jnp.maximum(h1, 0.0)
        ffn = jnp.dot(h1.astype(mm_dtype), w2_ref[0],
                      preferred_element_type=jnp.float32) + vec[3, :D]

        x = _layer_norm(x + ffn, vec[6, :D], vec[7, :D])
        x_sc[...] = x

        # ------------------- finalize after the last layer ---------------
        @pl.when(l == pl.num_programs(1) - 1)
        def _final():
            fin = fin_ref[...]                     # (4, D): lnf g, lnf b, gln g, gln b
            y = _layer_norm(x, fin[0], fin[1])     # encoder final LayerNorm
            y3 = y.reshape(Bblk, L, D)
            inv_n = 1.0 / float(L * D)
            # gLN: stats over (channel, time) per batch element
            mu = jnp.sum(jnp.sum(y3, axis=2, keepdims=True),
                         axis=1, keepdims=True) * inv_n
            d = y3 - mu
            var = jnp.sum(jnp.sum(d * d, axis=2, keepdims=True),
                          axis=1, keepdims=True) * inv_n
            g = d * lax.rsqrt(var + GLN_EPS) * fin[2] + fin[3]
            out_ref[...] = g + x_ref[...]          # wrapper skip connection

    return kernel


# --------------------------- VMEM budgeting ---------------------------
def _vec_pad(D, F):
    return max(128, _round_up(max(3 * D, F), 128))


def _estimate_vmem_bytes(Bblk, L, D, F, nhead, mm_itemsize):
    f32 = 4
    M = Bblk * L
    BH = nhead * Bblk
    io_block = Bblk * L * D * f32
    per_layer_w = (D * 3 * D + D * D + 2 * D * F) * mm_itemsize \
        + 8 * _vec_pad(D, F) * f32
    final_w = 4 * D * f32
    # live temporaries in one layer: qkv (f32 + head-major copy), the L^2
    # score / probability buffers, per-head output-proj partials, FFN hidden
    temps = (M * 3 * D * (f32 + mm_itemsize)
             + 2 * BH * L * L * f32
             + (2 + nhead) * M * D * f32
             + M * F * f32)
    return (2 * io_block            # double-buffered input block
            + 2 * io_block          # double-buffered output block
            + M * D * f32           # persistent activation carry
            + 2 * per_layer_w       # double-buffered streamed weights
            + 2 * final_w
            + temps)


def _vmem_capacity_bytes():
    try:
        cap = getattr(pltpu.get_tpu_info(), "vmem_capacity_bytes", None)
        if cap:
            return int(cap)
    except Exception:
        pass
    return 64 * _MiB    # conservative default (v7x per-TensorCore VMEM)


def _pick_batch_block(B, L, D, F, nhead, mm_itemsize, vmem_capacity,
                      target_rows=512):
    """Largest batch block that (a) leaves >=2 blocks on the 'parallel' axis
    when possible (two v7x TensorCores / v6e megacore), (b) keeps M = Bblk*L
    near the MXU row target and (c) fits the explicit VMEM budget."""
    divisors = [d for d in range(1, B + 1) if B % d == 0]
    budget = int(0.55 * vmem_capacity)

    def fits(d):
        return _estimate_vmem_bytes(d, L, D, F, nhead, mm_itemsize) <= budget

    preferred = [d for d in divisors if B // d >= 2] or divisors
    row_cap = max(target_rows, L)
    ok = [d for d in preferred if d * L <= row_cap and fits(d)]
    if not ok:
        ok = [d for d in divisors if fits(d)] or [1]
    return max(ok)


# ------------------------------ wrapper ------------------------------
def sb_transformer_block(x, params, num_layers, nhead, *,
                         batch_block=None, matmul_dtype=jnp.bfloat16,
                         approx_recip=True):
    """Forward of SBTransformerBlock_wnormandskip (inference)."""
    B, L, D = x.shape
    assert D % nhead == 0
    dh = D // nhead
    F = params['w1'].shape[-1]
    mm_itemsize = jnp.dtype(matmul_dtype).itemsize
    vmem_cap = _vmem_capacity_bytes()

    Bblk = batch_block if batch_block is not None else _pick_batch_block(
        B, L, D, F, nhead, mm_itemsize, vmem_cap)
    assert B % Bblk == 0
    nb = B // Bblk
    # TODO(synk): pad L to a multiple of 8 (key masking + masked gLN stats) and
    # D to a multiple of 128 (lane-dense output blocks) for non-aligned
    # production shapes; the test shapes here are aligned.

    scale = 1.0 / math.sqrt(dh)

    # ---- host-side weight repacking (one time) ----
    # column permutation: group each head's [q_h | k_h | v_h] so the in-kernel
    # head split is one stack of contiguous slabs; fold 1/sqrt(dh) into Q.
    perm = np.concatenate(
        [np.concatenate([np.arange(h * dh, (h + 1) * dh) + s * D
                         for s in range(3)]) for h in range(nhead)])
    col_scale = np.concatenate(
        [np.full(D, scale, np.float32), np.ones(2 * D, np.float32)])

    wqkv = ((params['wqkv'] * col_scale[None, None, :])[:, :, perm]
            ).astype(matmul_dtype)
    bqkv = (params['bqkv'] * col_scale[None, :])[:, perm]
    woh = params['wo'].reshape(num_layers, nhead, dh, D).astype(matmul_dtype)
    w1 = params['w1'].astype(matmul_dtype)
    w2 = params['w2'].astype(matmul_dtype)

    # pack the eight small per-layer vectors into one (num_layers, 8, P) slab
    P = _vec_pad(D, F)

    def pad_rows(v):
        return jnp.pad(v.astype(jnp.float32), ((0, 0), (0, P - v.shape[1])))

    vecs = jnp.stack([pad_rows(bqkv), pad_rows(params['bo']),
                      pad_rows(params['b1']), pad_rows(params['b2']),
                      pad_rows(params['ln1g']), pad_rows(params['ln1b']),
                      pad_rows(params['ln2g']), pad_rows(params['ln2b'])],
                     axis=1)                                       # (nl, 8, P)
    finals = jnp.concatenate([params['lnfg'], params['lnfb'],
                              params['glng'], params['glnb']], axis=0)  # (4, D)

    kernel = make_kernel(nhead, Bblk, L, D, F, matmul_dtype,
                         approx_recip=approx_recip)

    est = _estimate_vmem_bytes(Bblk, L, D, F, nhead, mm_itemsize)
    vmem_limit = int(min(0.9 * vmem_cap, max(32 * _MiB, 1.5 * est)))

    in_specs = [
        pl.BlockSpec((Bblk, L, D), lambda b, l: (b, 0, 0)),          # x
        pl.BlockSpec((1, D, 3 * D), lambda b, l: (l, 0, 0)),         # wqkv
        pl.BlockSpec((1, nhead, dh, D), lambda b, l: (l, 0, 0, 0)),  # wo head-major
        pl.BlockSpec((1, D, F), lambda b, l: (l, 0, 0)),             # w1
        pl.BlockSpec((1, F, D), lambda b, l: (l, 0, 0)),             # w2
        pl.BlockSpec((1, 8, P), lambda b, l: (l, 0, 0)),             # packed vectors
        pl.BlockSpec((4, D), lambda b, l: (0, 0)),                   # final params
    ]
    out_spec = pl.BlockSpec((Bblk, L, D), lambda b, l: (b, 0, 0))

    return pl.pallas_call(
        kernel,
        out_shape=jax.ShapeDtypeStruct((B, L, D), jnp.float32),
        grid_spec=pltpu.PrefetchScalarGridSpec(
            num_scalar_prefetch=0,
            grid=(nb, num_layers),
            in_specs=in_specs,
            out_specs=out_spec,
            scratch_shapes=[pltpu.VMEM((Bblk * L, D), jnp.float32)]),
        compiler_params=pltpu.CompilerParams(
            dimension_semantics=("parallel", "arbitrary"),
            vmem_limit_bytes=vmem_limit),
    )(x, wqkv, woh, w1, w2, vecs, finals)


# -------------------- pure-JAX reference (same math) --------------------
def reference_forward(x, params, num_layers, nhead):
    B, L, D = x.shape
    dh = D // nhead
    scale = 1.0 / math.sqrt(dh)
    hi = jax.lax.Precision.HIGHEST

    x0 = x
    out = x
    for l in range(num_layers):
        qkv = jnp.einsum('bld,de->ble', out, params['wqkv'][l], precision=hi) \
              + params['bqkv'][l]
        q, k, v = qkv[..., :D], qkv[..., D:2 * D], qkv[..., 2 * D:]
        q = q.reshape(B, L, nhead, dh).transpose(0, 2, 1, 3)
        k = k.reshape(B, L, nhead, dh).transpose(0, 2, 1, 3)
        v = v.reshape(B, L, nhead, dh).transpose(0, 2, 1, 3)
        s = jnp.einsum('bhqd,bhkd->bhqk', q, k, precision=hi) * scale
        s = s - jnp.max(s, axis=-1, keepdims=True)
        p = jnp.exp(s)
        p = p / jnp.sum(p, axis=-1, keepdims=True)
        a = jnp.einsum('bhqk,bhkd->bhqd', p, v, precision=hi)
        a = a.transpose(0, 2, 1, 3).reshape(B, L, D)
        a = jnp.einsum('bld,de->ble', a, params['wo'][l], precision=hi) + params['bo'][l]
        out = _layer_norm(out + a, params['ln1g'][l], params['ln1b'][l])
        h1 = jnp.maximum(
            jnp.einsum('bld,df->blf', out, params['w1'][l], precision=hi)
            + params['b1'][l], 0.0)
        f = jnp.einsum('blf,fd->bld', h1, params['w2'][l], precision=hi) + params['b2'][l]
        out = _layer_norm(out + f, params['ln2g'][l], params['ln2b'][l])
    out = _layer_norm(out, params['lnfg'][0], params['lnfb'][0])
    mu = jnp.mean(out, axis=(1, 2), keepdims=True)
    var = jnp.mean((out - mu) ** 2, axis=(1, 2), keepdims=True)
    out = (out - mu) * lax.rsqrt(var + GLN_EPS) * params['glng'][0] + params['glnb'][0]
    return out + x0


def init_params(key, num_layers, D, F):
    ks = jax.random.split(key, 8)

    def w(k, shape, s=0.05):
        return jax.random.normal(k, shape, jnp.float32) * s

    return dict(
        wqkv=w(ks[0], (num_layers, D, 3 * D)),
        bqkv=w(ks[1], (num_layers, 3 * D), 0.01),
        wo=w(ks[2], (num_layers, D, D)),
        bo=w(ks[3], (num_layers, D), 0.01),
        ln1g=jnp.ones((num_layers, D), jnp.float32),
        ln1b=jnp.zeros((num_layers, D), jnp.float32),
        w1=w(ks[4], (num_layers, D, F)),
        b1=w(ks[5], (num_layers, F), 0.01),
        w2=w(ks[6], (num_layers, F, D)),
        b2=w(ks[7], (num_layers, D), 0.01),
        ln2g=jnp.ones((num_layers, D), jnp.float32),
        ln2b=jnp.zeros((num_layers, D), jnp.float32),
        lnfg=jnp.ones((1, D), jnp.float32),
        lnfb=jnp.zeros((1, D), jnp.float32),
        glng=jnp.ones((1, D), jnp.float32),
        glnb=jnp.zeros((1, D), jnp.float32),
    )


if __name__ == "__main__":
    B, L, D = 2, 8, 32          # batch, time points, d_model (number of filters)
    NHEAD, FFN, NLAYERS = 4, 64, 2

    key = jax.random.PRNGKey(0)
    kx, kp = jax.random.split(key)
    x = jax.random.normal(kx, (B, L, D), jnp.float32)
    params = init_params(kp, NLAYERS, D, FFN)

    ref = jax.block_until_ready(reference_forward(x, params, NLAYERS, NHEAD))

    # strict numeric check with f32 matmul operands
    out_f32 = jax.block_until_ready(
        sb_transformer_block(x, params, NLAYERS, NHEAD,
                             matmul_dtype=jnp.float32))
    np.testing.assert_allclose(np.asarray(out_f32), np.asarray(ref),
                               rtol=2e-3, atol=2e-3)

    # production default: bf16 matmul operands, f32 accumulate (loose check)
    out_bf16 = jax.block_until_ready(
        sb_transformer_block(x, params, NLAYERS, NHEAD))
    np.testing.assert_allclose(np.asarray(out_bf16), np.asarray(ref),
                               rtol=1.5e-1, atol=1.5e-1)

    assert out_f32.shape == (B, L, D) and out_bf16.shape == (B, L, D)
    print("KERNEL_OK")
</pallas_src>

<mosaic_0001>
module attributes {stable_mosaic.version = 11 : i64} {
  func.func @kernel(%arg0: i32, %arg1: i32, %arg2: memref<1x8x32xf32, #tpu.memory_space<vmem>>, %arg3: memref<1x32x96xf32, #tpu.memory_space<vmem>>, %arg4: memref<1x4x8x32xf32, #tpu.memory_space<vmem>>, %arg5: memref<1x32x64xf32, #tpu.memory_space<vmem>>, %arg6: memref<1x64x32xf32, #tpu.memory_space<vmem>>, %arg7: memref<1x8x128xf32, #tpu.memory_space<vmem>>, %arg8: memref<4x32xf32, #tpu.memory_space<vmem>>, %arg9: memref<1x8x32xf32, #tpu.memory_space<vmem>>, %arg10: memref<8x32xf32, #tpu.memory_space<vmem>>) attributes {dimension_semantics = [#tpu.dimension_semantics<parallel>, #tpu.dimension_semantics<arbitrary>], iteration_bounds = array<i64: 2, 2>, scalar_prefetch = 0 : i64, scratch_operands = 1 : i64, tpu.core_type = #tpu.core_type<tc>, window_params = [{transform_indices = @transform_0, window_bounds = array<i64: 1, 8, 32>}, {transform_indices = @transform_1, window_bounds = array<i64: 1, 32, 96>}, {transform_indices = @transform_2, window_bounds = array<i64: 1, 4, 8, 32>}, {transform_indices = @transform_3, window_bounds = array<i64: 1, 32, 64>}, {transform_indices = @transform_4, window_bounds = array<i64: 1, 64, 32>}, {transform_indices = @transform_5, window_bounds = array<i64: 1, 8, 128>}, {pipeline_mode = #tpu.pipeline_mode<synchronous>, transform_indices = @transform_6, window_bounds = array<i64: 4, 32>}, {transform_indices = @transform_7, window_bounds = array<i64: 1, 8, 32>}]} {
    %c0_i32 = arith.constant 0 : i32
    %0 = arith.cmpi eq, %arg1, %c0_i32 : i32
    %1 = arith.extui %0 : i1 to i32
    %c0_i32_0 = arith.constant 0 : i32
    %2 = arith.cmpi ne, %1, %c0_i32_0 : i32
    scf.if %2 {
      %c0_40 = arith.constant 0 : index
      %c0_41 = arith.constant 0 : index
      %c0_42 = arith.constant 0 : index
      %127 = vector.load %arg2[%c0_40, %c0_41, %c0_42] : memref<1x8x32xf32, #tpu.memory_space<vmem>>, vector<1x8x32xf32>
      %128 = vector.shape_cast %127 : vector<1x8x32xf32> to vector<8x32xf32>
      %c0_43 = arith.constant 0 : index
      %c0_44 = arith.constant 0 : index
      %129 = vector.load %arg10[%c0_43, %c0_44] : memref<8x32xf32, #tpu.memory_space<vmem>>, vector<8x32xf32>
      tpu.vector_store %arg10[%c0_43, %c0_44], %128 {strides = array<i32>} : memref<8x32xf32, #tpu.memory_space<vmem>>, vector<8x32xf32>,
    } else {
    }
    %c0 = arith.constant 0 : index
    %c0_1 = arith.constant 0 : index
    %3 = vector.load %arg10[%c0, %c0_1] : memref<8x32xf32, #tpu.memory_space<vmem>>, vector<8x32xf32>
    %c0_2 = arith.constant 0 : index
    %c0_3 = arith.constant 0 : index
    %c0_4 = arith.constant 0 : index
    %4 = vector.load %arg7[%c0_2, %c0_3, %c0_4] : memref<1x8x128xf32, #tpu.memory_space<vmem>>, vector<1x8x128xf32>
    %5 = vector.shape_cast %4 : vector<1x8x128xf32> to vector<8x128xf32>
    %c0_5 = arith.constant 0 : index
    %c0_6 = arith.constant 0 : index
    %c0_7 = arith.constant 0 : index
    %6 = vector.load %arg3[%c0_5, %c0_6, %c0_7] : memref<1x32x96xf32, #tpu.memory_space<vmem>>, vector<1x32x96xf32>
    %7 = vector.shape_cast %6 : vector<1x32x96xf32> to vector<32x96xf32>
    %cst = arith.constant dense<0.000000e+00> : vector<8x96xf32>
    %8 = tpu.matmul %3, %7, %cst {dimension_numbers = #tpu.dot_dimension_numbers<[1], [0], [0], [1], [0, 0, 1, 1], [], []>} : vector<8x32xf32>, vector<32x96xf32>, vector<8x96xf32> -> vector<8x96xf32>
    %9 = vector.extract_strided_slice %5 {offsets = [0, 0], sizes = [1, 96], strides = [1, 1]} : vector<8x128xf32> to vector<1x96xf32>
    %10 = vector.shape_cast %9 : vector<1x96xf32> to vector<96xf32>
    %11 = vector.shape_cast %10 : vector<96xf32> to vector<1x96xf32>
    %12 = vector.broadcast %11 : vector<1x96xf32> to vector<8x96xf32>
    %13 = arith.addf %8, %12 : vector<8x96xf32>
    %14 = vector.extract_strided_slice %13 {offsets = [0, 0], sizes = [8, 24], strides = [1, 1]} : vector<8x96xf32> to vector<8x24xf32>
    %15 = vector.extract_strided_slice %13 {offsets = [0, 24], sizes = [8, 24], strides = [1, 1]} : vector<8x96xf32> to vector<8x24xf32>
    %16 = vector.extract_strided_slice %13 {offsets = [0, 48], sizes = [8, 24], strides = [1, 1]} : vector<8x96xf32> to vector<8x24xf32>
    %17 = vector.extract_strided_slice %13 {offsets = [0, 72], sizes = [8, 24], strides = [1, 1]} : vector<8x96xf32> to vector<8x24xf32>
    %18 = vector.shape_cast %14 : vector<8x24xf32> to vector<1x8x24xf32>
    %19 = vector.shape_cast %15 : vector<8x24xf32> to vector<1x8x24xf32>
    %20 = vector.shape_cast %16 : vector<8x24xf32> to vector<1x8x24xf32>
    %21 = vector.shape_cast %17 : vector<8x24xf32> to vector<1x8x24xf32>
    %22 = tpu.concatenate %18, %19, %20, %21 in 0 : vector<1x8x24xf32>, vector<1x8x24xf32>, vector<1x8x24xf32>, vector<1x8x24xf32> -> vector<4x8x24xf32>
    %23 = vector.extract_strided_slice %22 {offsets = [0, 0, 0], sizes = [4, 8, 8], strides = [1, 1, 1]} : vector<4x8x24xf32> to vector<4x8x8xf32>
    %24 = vector.extract_strided_slice %22 {offsets = [0, 0, 8], sizes = [4, 8, 8], strides = [1, 1, 1]} : vector<4x8x24xf32> to vector<4x8x8xf32>
    %25 = vector.extract_strided_slice %22 {offsets = [0, 0, 16], sizes = [4, 8, 8], strides = [1, 1, 1]} : vector<4x8x24xf32> to vector<4x8x8xf32>
    "tpu.trace_start"() <{level = 10 : i32, message = "bqd,bkd->bqk"}> : () -> ()
    %cst_8 = arith.constant dense<0.000000e+00> : vector<4x8x8xf32>
    %26 = tpu.matmul %23, %24, %cst_8 {dimension_numbers = #tpu.dot_dimension_numbers<[2], [2], [1], [1], [0, 0, 0, 1, 1, 1], [0], [0]>} : vector<4x8x8xf32>, vector<4x8x8xf32>, vector<4x8x8xf32> -> vector<4x8x8xf32>
    "tpu.trace_stop"() : () -> ()
    %cst_9 = arith.constant dense<0xFF800000> : vector<4x8xf32>
    %27 = vector.multi_reduction <maximumf>, %26, %cst_9 [2] : vector<4x8x8xf32> to vector<4x8xf32>
    %28 = vector.shape_cast %27 : vector<4x8xf32> to vector<4x8x1xf32>
    %29 = vector.broadcast %28 : vector<4x8x1xf32> to vector<4x8x8xf32>
    %30 = arith.subf %26, %29 : vector<4x8x8xf32>
    %31 = math.exp %30 : vector<4x8x8xf32>
    %cst_10 = arith.constant dense<0.000000e+00> : vector<4x8xf32>
    %32 = vector.multi_reduction <add>, %31, %cst_10 [2] : vector<4x8x8xf32> to vector<4x8xf32>
    %33 = vector.shape_cast %32 : vector<4x8xf32> to vector<4x8x1xf32>
    "tpu.trace_start"() <{level = 10 : i32, message = "bqk,bkd->bqd"}> : () -> ()
    %cst_11 = arith.constant dense<0.000000e+00> : vector<4x8x8xf32>
    %34 = tpu.matmul %31, %25, %cst_11 {dimension_numbers = #tpu.dot_dimension_numbers<[2], [1], [1], [2], [0, 0, 0, 1, 1, 2], [0], [0]>} : vector<4x8x8xf32>, vector<4x8x8xf32>, vector<4x8x8xf32> -> vector<4x8x8xf32>
    "tpu.trace_stop"() : () -> ()
    %35 = tpu.reciprocal %33 {approx = true} : vector<4x8x1xf32> -> vector<4x8x1xf32>
    %36 = vector.broadcast %35 : vector<4x8x1xf32> to vector<4x8x8xf32>
    %37 = arith.mulf %34, %36 : vector<4x8x8xf32>
    %c0_12 = arith.constant 0 : index
    %c0_13 = arith.constant 0 : index
    %c0_14 = arith.constant 0 : index
    %c0_15 = arith.constant 0 : index
    %38 = vector.load %arg4[%c0_12, %c0_13, %c0_14, %c0_15] : memref<1x4x8x32xf32, #tpu.memory_space<vmem>>, vector<1x4x8x32xf32>
    %39 = vector.shape_cast %38 : vector<1x4x8x32xf32> to vector<4x8x32xf32>
    "tpu.trace_start"() <{level = 10 : i32, message = "hmd,hde->hme"}> : () -> ()
    %cst_16 = arith.constant dense<0.000000e+00> : vector<4x8x32xf32>
    %40 = tpu.matmul %37, %39, %cst_16 {dimension_numbers = #tpu.dot_dimension_numbers<[2], [1], [1], [2], [0, 0, 0, 1, 1, 2], [0], [0]>} : vector<4x8x8xf32>, vector<4x8x32xf32>, vector<4x8x32xf32> -> vector<4x8x32xf32>
    "tpu.trace_stop"() : () -> ()
    %cst_17 = arith.constant dense<0.000000e+00> : vector<8x32xf32>
    %41 = vector.multi_reduction <add>, %40, %cst_17 [0] : vector<4x8x32xf32> to vector<8x32xf32>
    %42 = vector.extract_strided_slice %5 {offsets = [1, 0], sizes = [1, 32], strides = [1, 1]} : vector<8x128xf32> to vector<1x32xf32>
    %43 = vector.shape_cast %42 : vector<1x32xf32> to vector<32xf32>
    %44 = vector.shape_cast %43 : vector<32xf32> to vector<1x32xf32>
    %45 = vector.broadcast %44 : vector<1x32xf32> to vector<8x32xf32>
    %46 = arith.addf %41, %45 : vector<8x32xf32>
    %47 = arith.addf %3, %46 : vector<8x32xf32>
    %48 = vector.extract_strided_slice %5 {offsets = [4, 0], sizes = [1, 32], strides = [1, 1]} : vector<8x128xf32> to vector<1x32xf32>
    %49 = vector.shape_cast %48 : vector<1x32xf32> to vector<32xf32>
    %50 = vector.extract_strided_slice %5 {offsets = [5, 0], sizes = [1, 32], strides = [1, 1]} : vector<8x128xf32> to vector<1x32xf32>
    %51 = vector.shape_cast %50 : vector<1x32xf32> to vector<32xf32>
    %cst_18 = arith.constant dense<0.000000e+00> : vector<8xf32>
    %52 = vector.multi_reduction <add>, %47, %cst_18 [1] : vector<8x32xf32> to vector<8xf32>
    %53 = vector.shape_cast %52 : vector<8xf32> to vector<8x1xf32>
    %cst_19 = arith.constant 3.200000e+01 : f32
    %54 = vector.broadcast %cst_19 : f32 to vector<8x1xf32>
    %55 = arith.divf %53, %54 : vector<8x1xf32>
    %56 = vector.broadcast %55 : vector<8x1xf32> to vector<8x32xf32>
    %57 = arith.subf %47, %56 : vector<8x32xf32>
    %58 = arith.mulf %57, %57 : vector<8x32xf32>
    %cst_20 = arith.constant dense<0.000000e+00> : vector<8xf32>
    %59 = vector.multi_reduction <add>, %58, %cst_20 [1] : vector<8x32xf32> to vector<8xf32>
    %60 = vector.shape_cast %59 : vector<8xf32> to vector<8x1xf32>
    %cst_21 = arith.constant 3.200000e+01 : f32
    %61 = vector.broadcast %cst_21 : f32 to vector<8x1xf32>
    %62 = arith.divf %60, %61 : vector<8x1xf32>
    %63 = vector.broadcast %55 : vector<8x1xf32> to vector<8x32xf32>
    %64 = arith.subf %47, %63 : vector<8x32xf32>
    %cst_22 = arith.constant 9.99999997E-7 : f32
    %65 = vector.broadcast %cst_22 : f32 to vector<8x1xf32>
    %66 = arith.addf %62, %65 : vector<8x1xf32>
    %67 = math.rsqrt %66 : vector<8x1xf32>
    %68 = vector.broadcast %67 : vector<8x1xf32> to vector<8x32xf32>
    %69 = arith.mulf %64, %68 : vector<8x32xf32>
    %70 = vector.shape_cast %49 : vector<32xf32> to vector<1x32xf32>
    %71 = vector.broadcast %70 : vector<1x32xf32> to vector<8x32xf32>
    %72 = arith.mulf %69, %71 : vector<8x32xf32>
    %73 = vector.shape_cast %51 : vector<32xf32> to vector<1x32xf32>
    %74 = vector.broadcast %73 : vector<1x32xf32> to vector<8x32xf32>
    %75 = arith.addf %72, %74 : vector<8x32xf32>
    %c0_23 = arith.constant 0 : index
    %c0_24 = arith.constant 0 : index
    %c0_25 = arith.constant 0 : index
    %76 = vector.load %arg5[%c0_23, %c0_24, %c0_25] : memref<1x32x64xf32, #tpu.memory_space<vmem>>, vector<1x32x64xf32>
    %77 = vector.shape_cast %76 : vector<1x32x64xf32> to vector<32x64xf32>
    %cst_26 = arith.constant dense<0.000000e+00> : vector<8x64xf32>
    %78 = tpu.matmul %75, %77, %cst_26 {dimension_numbers = #tpu.dot_dimension_numbers<[1], [0], [0], [1], [0, 0, 1, 1], [], []>} : vector<8x32xf32>, vector<32x64xf32>, vector<8x64xf32> -> vector<8x64xf32>
    %79 = vector.extract_strided_slice %5 {offsets = [2, 0], sizes = [1, 64], strides = [1, 1]} : vector<8x128xf32> to vector<1x64xf32>
    %80 = vector.shape_cast %79 : vector<1x64xf32> to vector<64xf32>
    %81 = vector.shape_cast %80 : vector<64xf32> to vector<1x64xf32>
    %82 = vector.broadcast %81 : vector<1x64xf32> to vector<8x64xf32>
    %83 = arith.addf %78, %82 : vector<8x64xf32>
    %cst_27 = arith.constant 0.000000e+00 : f32
    %84 = vector.broadcast %cst_27 : f32 to vector<8x64xf32>
    %85 = arith.maximumf %83, %84 : vector<8x64xf32>
    %c0_28 = arith.constant 0 : index
    %c0_29 = arith.constant 0 : index
    %c0_30 = arith.constant 0 : index
    %86 = vector.load %arg6[%c0_28, %c0_29, %c0_30] : memref<1x64x32xf32, #tpu.memory_space<vmem>>, vector<1x64x32xf32>
    %87 = vector.shape_cast %86 : vector<1x64x32xf32> to vector<64x32xf32>
    %cst_31 = arith.constant dense<0.000000e+00> : vector<8x32xf32>
    %88 = tpu.matmul %85, %87, %cst_31 {dimension_numbers = #tpu.dot_dimension_numbers<[1], [0], [0], [1], [0, 0, 1, 1], [], []>} : vector<8x64xf32>, vector<64x32xf32>, vector<8x32xf32> -> vector<8x32xf32>
    %89 = vector.extract_strided_slice %5 {offsets = [3, 0], sizes = [1, 32], strides = [1, 1]} : vector<8x128xf32> to vector<1x32xf32>
    %90 = vector.shape_cast %89 : vector<1x32xf32> to vector<32xf32>
    %91 = vector.shape_cast %90 : vector<32xf32> to vector<1x32xf32>
    %92 = vector.broadcast %91 : vector<1x32xf32> to vector<8x32xf32>
    %93 = arith.addf %88, %92 : vector<8x32xf32>
    %94 = arith.addf %75, %93 : vector<8x32xf32>
    %95 = vector.extract_strided_slice %5 {offsets = [6, 0], sizes = [1, 32], strides = [1, 1]} : vector<8x128xf32> to vector<1x32xf32>
    %96 = vector.shape_cast %95 : vector<1x32xf32> to vector<32xf32>
    %97 = vector.extract_strided_slice %5 {offsets = [7, 0], sizes = [1, 32], strides = [1, 1]} : vector<8x128xf32> to vector<1x32xf32>
    %98 = vector.shape_cast %97 : vector<1x32xf32> to vector<32xf32>
    %cst_32 = arith.constant dense<0.000000e+00> : vector<8xf32>
    %99 = vector.multi_reduction <add>, %94, %cst_32 [1] : vector<8x32xf32> to vector<8xf32>
    %100 = vector.shape_cast %99 : vector<8xf32> to vector<8x1xf32>
    %cst_33 = arith.constant 3.200000e+01 : f32
    %101 = vector.broadcast %cst_33 : f32 to vector<8x1xf32>
    %102 = arith.divf %100, %101 : vector<8x1xf32>
    %103 = vector.broadcast %102 : vector<8x1xf32> to vector<8x32xf32>
    %104 = arith.subf %94, %103 : vector<8x32xf32>
    %105 = arith.mulf %104, %104 : vector<8x32xf32>
    %cst_34 = arith.constant dense<0.000000e+00> : vector<8xf32>
    %106 = vector.multi_reduction <add>, %105, %cst_34 [1] : vector<8x32xf32> to vector<8xf32>
    %107 = vector.shape_cast %106 : vector<8xf32> to vector<8x1xf32>
    %cst_35 = arith.constant 3.200000e+01 : f32
    %108 = vector.broadcast %cst_35 : f32 to vector<8x1xf32>
    %109 = arith.divf %107, %108 : vector<8x1xf32>
    %110 = vector.broadcast %102 : vector<8x1xf32> to vector<8x32xf32>
    %111 = arith.subf %94, %110 : vector<8x32xf32>
    %cst_36 = arith.constant 9.99999997E-7 : f32
    %112 = vector.broadcast %cst_36 : f32 to vector<8x1xf32>
    %113 = arith.addf %109, %112 : vector<8x1xf32>
    %114 = math.rsqrt %113 : vector<8x1xf32>
    %115 = vector.broadcast %114 : vector<8x1xf32> to vector<8x32xf32>
    %116 = arith.mulf %111, %115 : vector<8x32xf32>
    %117 = vector.shape_cast %96 : vector<32xf32> to vector<1x32xf32>
    %118 = vector.broadcast %117 : vector<1x32xf32> to vector<8x32xf32>
    %119 = arith.mulf %116, %118 : vector<8x32xf32>
    %120 = vector.shape_cast %98 : vector<32xf32> to vector<1x32xf32>
    %121 = vector.broadcast %120 : vector<1x32xf32> to vector<8x32xf32>
    %122 = arith.addf %119, %121 : vector<8x32xf32>
    %c0_37 = arith.constant 0 : index
    %c0_38 = arith.constant 0 : index
    %123 = vector.load %arg10[%c0_37, %c0_38] : memref<8x32xf32, #tpu.memory_space<vmem>>, vector<8x32xf32>
    tpu.vector_store %arg10[%c0_37, %c0_38], %122 {strides = array<i32>} : memref<8x32xf32, #tpu.memory_space<vmem>>, vector<8x32xf32>,
    %c1_i32 = arith.constant 1 : i32
    %124 = arith.cmpi eq, %arg1, %c1_i32 : i32
    %125 = arith.extui %124 : i1 to i32
    %c0_i32_39 = arith.constant 0 : i32
    %126 = arith.cmpi ne, %125, %c0_i32_39 : i32
    scf.if %126 {
      %c0_40 = arith.constant 0 : index
      %c0_41 = arith.constant 0 : index
      %127 = vector.load %arg8[%c0_40, %c0_41] : memref<4x32xf32, #tpu.memory_space<vmem>>, vector<4x32xf32>
      %128 = vector.extract_strided_slice %127 {offsets = [0, 0], sizes = [1, 32], strides = [1, 1]} : vector<4x32xf32> to vector<1x32xf32>
      %129 = vector.shape_cast %128 : vector<1x32xf32> to vector<32xf32>
      %130 = vector.extract_strided_slice %127 {offsets = [1, 0], sizes = [1, 32], strides = [1, 1]} : vector<4x32xf32> to vector<1x32xf32>
      %131 = vector.shape_cast %130 : vector<1x32xf32> to vector<32xf32>
      %cst_42 = arith.constant dense<0.000000e+00> : vector<8xf32>
      %132 = vector.multi_reduction <add>, %122, %cst_42 [1] : vector<8x32xf32> to vector<8xf32>
      %133 = vector.shape_cast %132 : vector<8xf32> to vector<8x1xf32>
      %cst_43 = arith.constant 3.200000e+01 : f32
      %134 = vector.broadcast %cst_43 : f32 to vector<8x1xf32>
      %135 = arith.divf %133, %134 : vector<8x1xf32>
      %136 = vector.broadcast %135 : vector<8x1xf32> to vector<8x32xf32>
      %137 = arith.subf %122, %136 : vector<8x32xf32>
      %138 = arith.mulf %137, %137 : vector<8x32xf32>
      %cst_44 = arith.constant dense<0.000000e+00> : vector<8xf32>
      %139 = vector.multi_reduction <add>, %138, %cst_44 [1] : vector<8x32xf32> to vector<8xf32>
      %140 = vector.shape_cast %139 : vector<8xf32> to vector<8x1xf32>
      %cst_45 = arith.constant 3.200000e+01 : f32
      %141 = vector.broadcast %cst_45 : f32 to vector<8x1xf32>
      %142 = arith.divf %140, %141 : vector<8x1xf32>
      %143 = vector.broadcast %135 : vector<8x1xf32> to vector<8x32xf32>
      %144 = arith.subf %122, %143 : vector<8x32xf32>
      %cst_46 = arith.constant 9.99999997E-7 : f32
      %145 = vector.broadcast %cst_46 : f32 to vector<8x1xf32>
      %146 = arith.addf %142, %145 : vector<8x1xf32>
      %147 = math.rsqrt %146 : vector<8x1xf32>
      %148 = vector.broadcast %147 : vector<8x1xf32> to vector<8x32xf32>
      %149 = arith.mulf %144, %148 : vector<8x32xf32>
      %150 = vector.shape_cast %129 : vector<32xf32> to vector<1x32xf32>
      %151 = vector.broadcast %150 : vector<1x32xf32> to vector<8x32xf32>
      %152 = arith.mulf %149, %151 : vector<8x32xf32>
      %153 = vector.shape_cast %131 : vector<32xf32> to vector<1x32xf32>
      %154 = vector.broadcast %153 : vector<1x32xf32> to vector<8x32xf32>
      %155 = arith.addf %152, %154 : vector<8x32xf32>
      %156 = vector.shape_cast %155 : vector<8x32xf32> to vector<1x8x32xf32>
      %cst_47 = arith.constant dense<0.000000e+00> : vector<1x8xf32>
      %157 = vector.multi_reduction <add>, %156, %cst_47 [2] : vector<1x8x32xf32> to vector<1x8xf32>
      %158 = vector.shape_cast %157 : vector<1x8xf32> to vector<1x8x1xf32>
      %cst_48 = arith.constant dense<0.000000e+00> : vector<1x1xf32>
      %159 = vector.multi_reduction <add>, %158, %cst_48 [1] : vector<1x8x1xf32> to vector<1x1xf32>
      %160 = vector.shape_cast %159 : vector<1x1xf32> to vector<1x1x1xf32>
      %cst_49 = arith.constant 3.906250e-03 : f32
      %161 = vector.broadcast %cst_49 : f32 to vector<1x1x1xf32>
      %162 = arith.mulf %160, %161 : vector<1x1x1xf32>
      %163 = vector.broadcast %162 : vector<1x1x1xf32> to vector<1x8x32xf32>
      %164 = arith.subf %156, %163 : vector<1x8x32xf32>
      %165 = arith.mulf %164, %164 : vector<1x8x32xf32>
      %cst_50 = arith.constant dense<0.000000e+00> : vector<1x8xf32>
      %166 = vector.multi_reduction <add>, %165, %cst_50 [2] : vector<1x8x32xf32> to vector<1x8xf32>
      %167 = vector.shape_cast %166 : vector<1x8xf32> to vector<1x8x1xf32>
      %cst_51 = arith.constant dense<0.000000e+00> : vector<1x1xf32>
      %168 = vector.multi_reduction <add>, %167, %cst_51 [1] : vector<1x8x1xf32> to vector<1x1xf32>
      %169 = vector.shape_cast %168 : vector<1x1xf32> to vector<1x1x1xf32>
      %cst_52 = arith.constant 3.906250e-03 : f32
      %170 = vector.broadcast %cst_52 : f32 to vector<1x1x1xf32>
      %171 = arith.mulf %169, %170 : vector<1x1x1xf32>
      %cst_53 = arith.constant 1.1920929E-7 : f32
      %172 = vector.broadcast %cst_53 : f32 to vector<1x1x1xf32>
      %173 = arith.addf %171, %172 : vector<1x1x1xf32>
      %174 = math.rsqrt %173 : vector<1x1x1xf32>
      %175 = vector.broadcast %174 : vector<1x1x1xf32> to vector<1x8x32xf32>
      %176 = arith.mulf %164, %175 : vector<1x8x32xf32>
      %177 = vector.extract_strided_slice %127 {offsets = [2, 0], sizes = [1, 32], strides = [1, 1]} : vector<4x32xf32> to vector<1x32xf32>
      %178 = vector.shape_cast %177 : vector<1x32xf32> to vector<32xf32>
      %179 = vector.shape_cast %178 : vector<32xf32> to vector<1x1x32xf32>
      %180 = vector.broadcast %179 : vector<1x1x32xf32> to vector<1x8x32xf32>
      %181 = arith.mulf %176, %180 : vector<1x8x32xf32>
      %182 = vector.extract_strided_slice %127 {offsets = [3, 0], sizes = [1, 32], strides = [1, 1]} : vector<4x32xf32> to vector<1x32xf32>
      %183 = vector.shape_cast %182 : vector<1x32xf32> to vector<32xf32>
      %184 = vector.shape_cast %183 : vector<32xf32> to vector<1x1x32xf32>
      %185 = vector.broadcast %184 : vector<1x1x32xf32> to vector<1x8x32xf32>
      %186 = arith.addf %181, %185 : vector<1x8x32xf32>
      %c0_54 = arith.constant 0 : index
      %c0_55 = arith.constant 0 : index
      %c0_56 = arith.constant 0 : index
      %187 = vector.load %arg2[%c0_54, %c0_55, %c0_56] : memref<1x8x32xf32, #tpu.memory_space<vmem>>, vector<1x8x32xf32>
      %188 = arith.addf %186, %187 : vector<1x8x32xf32>
      %c0_57 = arith.constant 0 : index
      %c0_58 = arith.constant 0 : index
      %c0_59 = arith.constant 0 : index
      %189 = vector.load %arg9[%c0_57, %c0_58, %c0_59] : memref<1x8x32xf32, #tpu.memory_space<vmem>>, vector<1x8x32xf32>
      tpu.vector_store %arg9[%c0_57, %c0_58, %c0_59], %188 {strides = array<i32>} : memref<1x8x32xf32, #tpu.memory_space<vmem>>, vector<1x8x32xf32>,
    } else {
    }
    return
  }
  func.func @transform_0(%arg0: i32, %arg1: i32) -> (i32, i32, i32) {
    %c0_i32 = arith.constant 0 : i32
    %c0_i32_0 = arith.constant 0 : i32
    %c0_i32_1 = arith.constant 0 : i32
    return %arg0, %c0_i32, %c0_i32_0 : i32, i32, i32
  }
  func.func @transform_1(%arg0: i32, %arg1: i32) -> (i32, i32, i32) {
    %c0_i32 = arith.constant 0 : i32
    %c0_i32_0 = arith.constant 0 : i32
    %c0_i32_1 = arith.constant 0 : i32
    return %arg1, %c0_i32, %c0_i32_0 : i32, i32, i32
  }
  func.func @transform_2(%arg0: i32, %arg1: i32) -> (i32, i32, i32, i32) {
    %c0_i32 = arith.constant 0 : i32
    %c0_i32_0 = arith.constant 0 : i32
    %c0_i32_1 = arith.constant 0 : i32
    %c0_i32_2 = arith.constant 0 : i32
    return %arg1, %c0_i32, %c0_i32_0, %c0_i32_1 : i32, i32, i32, i32
  }
  func.func @transform_3(%arg0: i32, %arg1: i32) -> (i32, i32, i32) {
    %c0_i32 = arith.constant 0 : i32
    %c0_i32_0 = arith.constant 0 : i32
    %c0_i32_1 = arith.constant 0 : i32
    return %arg1, %c0_i32, %c0_i32_0 : i32, i32, i32
  }
  func.func @transform_4(%arg0: i32, %arg1: i32) -> (i32, i32, i32) {
    %c0_i32 = arith.constant 0 : i32
    %c0_i32_0 = arith.constant 0 : i32
    %c0_i32_1 = arith.constant 0 : i32
    return %arg1, %c0_i32, %c0_i32_0 : i32, i32, i32
  }
  func.func @transform_5(%arg0: i32, %arg1: i32) -> (i32, i32, i32) {
    %c0_i32 = arith.constant 0 : i32
    %c0_i32_0 = arith.constant 0 : i32
    %c0_i32_1 = arith.constant 0 : i32
    return %arg1, %c0_i32, %c0_i32_0 : i32, i32, i32
  }
  func.func @transform_6(%arg0: i32, %arg1: i32) -> (i32, i32) {
    %c0_i32 = arith.constant 0 : i32
    %c0_i32_0 = arith.constant 0 : i32
    %c0_i32_1 = arith.constant 0 : i32
    return %c0_i32, %c0_i32_0 : i32, i32
  }
  func.func @transform_7(%arg0: i32, %arg1: i32) -> (i32, i32, i32) {
    %c0_i32 = arith.constant 0 : i32
    %c0_i32_0 = arith.constant 0 : i32
    %c0_i32_1 = arith.constant 0 : i32
    return %arg0, %c0_i32, %c0_i32_0 : i32, i32, i32
  }
}

</mosaic_0001>

<bundles_post_ra>
// kernel: tpu_custom_call.1
= control target key start
LH: loop header
LB: loop body
LE: loop exit
PB: predicated region body
PF: predicated region fallthrough
CT: control target
= control target key end

     0   :  { %s1958_s0 = inlined_call_operand.hbm [shape: f32[2,8,32], index: 0, kind: input, shape index: {}]   ;;  %s1959_s1 = inlined_call_operand.vmem [shape: f32[2,32,96], index: 1, kind: input, shape index: {}]   ;;  %s1960_s2 = inlined_call_operand.vmem [shape: f32[2,4,8,32], index: 2, kind: input, shape index: {}]   ;;  %s1961_s3 = inlined_call_operand.vmem [shape: f32[2,32,64], index: 3, kind: input, shape index: {}]   ;;  %s1962_s4 = inlined_call_operand.vmem [shape: f32[2,64,32], index: 4, kind: input, shape index: {}]   ;;  %s1963_s5 = inlined_call_operand.hbm [shape: f32[2,8,128], index: 5, kind: input, shape index: {}]   ;;  %s1964_s6 = inlined_call_operand.vmem [shape: f32[4,32], index: 6, kind: input, shape index: {}]   ;;  %s1965_s7 = inlined_call_operand.hbm [shape: f32[2,8,32], index: 7, kind: output, shape index: {}]  }
   0x1   :  { %1975 = sst [smem:[#allocation20_spill]] %s1958_s0 }
   0x2   :  { %1976 = sst [smem:[#allocation21_spill]] %s1962_s4 }
   0x3   :  { %1977 = sst [smem:[#allocation22_spill]] %s1963_s5 }
   0x4   :  { %1978 = sst [smem:[#allocation23_spill]] %s1964_s6 }
   0x5   :  { %1979 = sst [smem:[#allocation24_spill]] %s1965_s7 }
   0x6   :  { %12 = vsyncpa [#allocation4], 0 }
   0x7   :  { %14 = vsyncpa [#allocation4 + $0x1], 0 }
   0x8   :  { %15 = vsyncpa [#allocation7], 0 }
   0x9   :  { %17 = vsyncpa [#allocation7 + $0x1], 0 }
   0xa   :  { %18 = vsyncpa [#allocation5], 0 }
   0xb   :  { %20 = vsyncpa [#allocation5 + $0x1], 0  ;;  %s1626_s24 = smov 0   ;;  %s1628_s25 = smov 0  }
   0xc   :  { %s1630_s26 = smov 0   ;;  %s1632_s27 = smov 0  }
   0xd   :  { %s1634_s28 = smov 0   ;;  %s1636_s29 = smov 0  }
   0xe   :  { %s1638_s30 = smov 0   ;;  %s1640_s8 = smov 0  }
   0xf   :  { %s1642_s9 = smov 0   ;;  %s1644_s10 = smov 0  }
  0x10   :  { %s1646_s11 = smov 0  }
  0x11 LB: > { %1980 = sst [smem:[#allocation12_spill]] %s1550_s27  ;;  %s1194_s12 = sadd.s32 4294967295, %s1578_s11   ;;  %s1578_s11 = sphi %s1646_s11, %s26_s11   ;;  %s1574_s10 = sphi %s1644_s10, %s2010_s10   ;;  %s1570_s9 = sphi %s1642_s9, %s2009_s9   ;;  %s1566_s8 = sphi %s1640_s8, %s2008_s8   ;;  %s1562_s30 = sphi %s1638_s30, %s2007_s30   ;;  %s1558_s29 = sphi %s1636_s29, %s2016_s29   ;;  %s1554_s28 = sphi %s1634_s28, %s2015_s28   ;;  %s1550_s27 = sphi %s1632_s27, %s2014_s27   ;;  %s1546_s26 = sphi %s1630_s26, %s2013_s26   ;;  %s1542_s25 = sphi %s1628_s25, %s2012_s25   ;;  %s1538_s24 = sphi %s1626_s24, %s2011_s24  }
  0x12   : > { %1981 = sst [smem:[#allocation13_spill]] %s1566_s8  ;;  %s1195_s13 = sadd.s32 4294967294, %s1578_s11  }
  0x13   : > { %1982 = sst [smem:[#allocation14_spill]] %s1570_s9  ;;  %p52_p0 = scmp.ne.s32.totalorder %s1558_s29, %s1554_s28 }
  0x14   : > { %1983 = sst [smem:[#allocation15_spill]] %s1574_s10  ;;  %p53_p1 = scmp.eq.s32.totalorder %s1578_s11, 0 }
  0x15   : > { %p58_p2 = scmp.ne.s32.totalorder %s1554_s28, %s1550_s27  ;;  %p1690_p3 = scmp.eq.s32.totalorder %s1194_s12, 0 }
  0x16   : > { %p1696_p4 = por %p53_p1, %p52_p0  ;;  %p233_p5 = scmp.eq.s32.totalorder %s1194_s12, 3 }
  0x17   : > { %p1702_p6 = por %p1690_p3, %p58_p2  ;;  %p239_p7 = scmp.eq.s32.totalorder %s1195_s13, 3 }
  0x18   : > { %p1706_p8 = por %p233_p5, %p52_p0  ;;  %p1260_p10 = scmp.lt.s32.totalorder %s1578_s11, 4 }
  0x19   : > { %p1710_p9 = por %p239_p7, %p58_p2  ;;  %s262_s21 = sand.u32 1, %s1558_s29  }
  0x1a   : > { %s1987_s19 = scalar_select %p1706_p8, 1, 0 }
  0x1b   : > { %s1989_s20 = scalar_select %p1710_p9, 1, 0 }
  0x1c   : > { %1988 = sst [smem:[#allocation16_spill]] %s1987_s19  ;;  %s1199_s22 = sshll.u32 %s1574_s10, 3 }
  0x1d   : > { %1990 = sst [smem:[#allocation17_spill]] %s1989_s20  ;;  %s1198_s23 = sshll.u32 %s262_s21, 3 }
  0x1e   : > { %s1991_s0 = sld [smem:[#allocation20_spill]]  ;;  %s266_s27 = scalar_lea.vmem [#allocation3], %s1198_s23 }
  0x1f   : > { %s274_s7 = sshll.u32 %s266_s27, 4  ;;  %p1250_p11 = pnand %p1260_p10, %p1696_p4  ;;  %s275_s7 = int_to_ptr.vmem [resolvable:$true] %s274_s7 }
  0x20   : > { %p1202_p12 = scmp.ge.s32.totalorder %s1578_s11, 1  ;;  %p330_p13 = scmp.lt.s32.totalorder %s1578_s11, 5 }
  0x21   : > { %s263_s15 = scalar_lea.sflag [#allocation4], %s262_s21  ;;  %s35_s27 = sadd.s32 1, %s1570_s9 }
  0x22   : > { %p1726_p0 = pnand %p1202_p12, %p330_p13  ;;  %p36_p2 = scmp.ge.s32.totalorder %s35_s27, 2 }
  0x23   : > { %s175_s23 = sadd.s32 1, %s1546_s26  ;;  %p182_p5 = scmp.ne.s32.totalorder %s1546_s26, %s1542_s25 }
  0x24   : > { %s270_s13 = scalar_lea.hbm %s1991_s0, %s1199_s22  ;;  %p188_p4 = scmp.ne.s32.totalorder %s1542_s25, %s1538_s24 }
  0x25   : > { %s272_s14 = sshll.u32 %s270_s13, 4  ;;  %s2018_s27 = smov (%p36_p2, %s35_s27), 0  ;;  %s273_s14 = int_to_ptr.hbm [resolvable:$true] %s272_s14 }
  0x26   : > { %1252 = dma.hbm_to_vmem [thread:$0]  (!%p1250_p11), %s273_s14, 128, %s275_s7, %s263_s15  }
  0x27   : > { %1993 = sst [smem:[#allocation18_spill]] %s2018_s27  ;;  %s1994_s17 = sadd.s32 1, %s1574_s10 }
  0x28   : > { %s2020_s17 = smov (!%p36_p2, %s1994_s17), %s1574_s10  ;;  %s172_s7 = ssub.s32 %s1570_s9, %s2018_s27 }
  0x29   : > { %p1745_p7 = por %p182_p5, %p53_p1  ;;  %p40_p11 = scmp.ge.s32.totalorder %s2020_s17, 2 }
  0x2a   : > { %p173_p12 = scmp.eq.s32.totalorder %s172_s7, 0  ;;  %p1751_p13 = por %p188_p4, %p1690_p3 }
  0x2b   : > { %s313_s24 = sand.u32 1, %s1546_s26   ;;  %s2022_s17 = smov (%p40_p11, %s2020_s17), 0 }
  0x2c   : > { %1997 = sst [smem:[#allocation19_spill]] %s2022_s17  ;;  %s42_s13 = ssub.s32 %s1574_s10, %s2022_s17 }
  0x2d   : > { %s1759_s12 = scalar_select %p173_p12, %s1546_s26, %s175_s23  }
  0x2e   : > { %p43_p1 = scmp.eq.s32.totalorder %s42_s13, 0  ;;  %s1200_s15 = sshll.u32 %s313_s24, 3 }
  0x2f   : > { %s1201_s0 = sshll.u32 %s1570_s9, 3  ;;  %s1998_s27 = sadd.s32 1, %s1558_s29 }
  0x30   : > { %s1767_s20 = scalar_select %p43_p1, %s1558_s29, %s1998_s27  }
  0x31   : > { %s1999_s5 = sld [smem:[#allocation22_spill]]  ;;  %s317_s8 = scalar_lea.vmem [#allocation6], %s1200_s15 }
  0x32   : > { %s325_s6 = sshll.u32 %s317_s8, 4  ;;  %p1253_p3 = pnand %p1260_p10, %p1745_p7  ;;  %s326_s6 = int_to_ptr.vmem [resolvable:$true] %s325_s6 }
  0x33   : > { %s314_s23 = scalar_lea.sflag [#allocation7], %s313_s24  ;;  %s1779_s27 = sand.u32 (!%p1726_p0), 1, %s1554_s28  }
  0x34   : > { %s337_s13 = scalar_lea.sflag (!%p1726_p0), [#allocation4], %s1779_s27 }
  0x35   : > { %334 = sbr.rel (%p1726_p0) target bundleno = 2373 (0x945), region = 48 }
  0x37   : > { %s321_s19 = scalar_lea.hbm %s1999_s5, %s1201_s0  ;;  %s1203_s0 = sshll.u32 (!%p1726_p0), %s1779_s27, 3 }
  0x38   : > { %s323_s4 = sshll.u32 %s321_s19, 4  ;;  %s1783_s8 = scalar_lea.vmem (!%p1726_p0), [#allocation3], %s1203_s0  ;;  %s324_s4 = int_to_ptr.hbm [resolvable:$true] %s323_s4 }
  0x39   : > { %1255 = dma.hbm_to_vmem [thread:$0]  (!%p1253_p3), %s324_s4, 128, %s326_s6, %s314_s23  }
  0x3a   : > { %1525 = dma.done.wait (%p1702_p6), %s337_s13, 128  }
  0x3b   : > { %1527 = vsyncadd (%p1702_p6), %s337_s13, 4294967168  ;;  %s346_s4 = sand.u32 1, %s1542_s25  }
  0x3c   : > { %s1790_s6 = sshll.u32 %s346_s4, 3  ;;  %s347_s19 = scalar_lea.sflag [#allocation7], %s346_s4 }
  0x3d   : > { %s350_s22 = scalar_lea.vmem [#allocation6], %s1790_s6 }
  0x3e   : > { %1529 = dma.done.wait (%p1751_p13), %s347_s19, 128  }
  0x3f   : > { %1531 = vsyncadd (%p1751_p13), %s347_s19, 4294967168  ;;  %p407_p10 = scmp.lt.s32.totalorder %s1562_s30, 1  ;;  %s2000_s10 = sld [smem:[#allocation21_spill]] }
  0x40   : > { %p1214_p6 = scmp.ne.s32.totalorder %s1562_s30, 0 }
  0x41   : > { %s408_s14 = scalar_select %p407_p10, %s1562_s30, 1 }
  0x42   : > { %430 = sbr.rel (%p1214_p6) target bundleno = 73 (0x49), region = 60 }
  0x43   : > { %s1239_s24 = sshll.u32 %s408_s14, 5  ;;  %s1242_s18 = sshll.u32 %s408_s14, 6 }
  0x44   : > { %s411_s7 = scalar_lea.vmem %s1959_s1, %s1239_s24  ;;  %s1805_s4 = scalar_lea.vmem %s1960_s2, %s1239_s24 }
  0x45   : > { %s1810_s21 = scalar_lea.vmem %s1961_s3, %s1239_s24  ;;  %s1815_s9 = scalar_lea.vmem %s2000_s10, %s1242_s18 }
  0x46   : > { %s1817_s14 = scalar_lea.vmem [#allocation8], %s1203_s0 }
  0x47   : > { %v431_v0 = vld [vmem:[%s1783_s8] sm:$0xff]  ;;  %vm432_vm0 = vcmask 261120  }
  0x48   : > { %433 = vst.msk [vmem:[#allocation2] sm:$0xff] %vm432_vm0, %v431_v0 }
  0x49 PF: > { %v439_v1 = vld [vmem:[%s411_s7 + $0x18] sm:$0xff]  ;;  %v438_v2 = vld [vmem:[%s411_s7 + $0x10] sm:$0xff]  ;;  %v437_v3 = vld [vmem:[%s411_s7 + $0x8] sm:$0xff]  ;;  %vm441_vm1 = vcmask 261120   ;;  %s1580_s5 = smov 120   ;;  %s1581_s10 = smov 56  }
  0x4a   : > { %457 = vmatpush.msra.mxu0 %v439_v1  ;;  %v436_v4 = vld [vmem:[%s411_s7] sm:$0xff]  ;;  %s1582_s17 = smov 104   ;;  %s1583_s0 = smov 80   ;;  %vm474_vm2 = vcmask 64512   ;;  %v727_v58 = vld [vmem:[%s1805_s4 + $0x10] sm:$0xff]  ;;  %v726_v59 = vld [vmem:[%s1805_s4 + $0x8] sm:$0xff] }
  0x4b   : > { %v1825_v6 = vld [vmem:[%s350_s22] sm:$0xff]  ;;  %s1584_s22 = smov 112   ;;  %vm902_vm7 = vcmask 523264   ;;  %p1234_p0 = scmp.ne.s32.totalorder %s1562_s30, 1 }
  0x4c   : > { %458 = vmatpush.msra.mxu0 %v438_v2  ;;  %v440_v7 = vperm.slane %v1825_v6, 0  ;;  %v725_v43 = vld [vmem:[%s1805_s4] sm:$0xff]  ;;  %v728_v61 = vld [vmem:[%s1805_s4 + $0x18] sm:$0xff]  ;;  %s2001_s24 = sld [smem:[#allocation23_spill]] (!%p1234_p0) }
  0x4e   : > { %459 = vmatpush.msra.mxu0 %v437_v3 }
  0x4f   : > { %v1821_v5 = vld [vmem:[#allocation2] sm:$0xff] }
  0x50   : > { %460 = vmatpush.msra.mxu0 %v436_v4 }
  0x51   : > { %1215 = vmatmul.msk.f32.vlgmr.msra.gmra.mxu0 %vm441_vm1, %v1821_v5 }
  0xce   : > { %v462_v8 = vpop.f32.mrf.mxu0 }
  0xcf   : > { %v463_v9 = vadd.f32 %v462_v8, %v440_v7 }
  0xd1   : > { %472 = vrot.lane.b32.xlu2 %v463_v9, %s1580_s5  ;;  %470 = vrot.lane.b32.xlu1 %v463_v9, %s1581_s10 }
  0xd2   : > { %466 = vrot.lane.b32.xlu0 %v463_v9, %s1582_s17 }
  0xda   : > { %468 = vrot.lane.b32.xlu0 %v463_v9, %s1583_s0 }
 0x12b   : > { %v473_v10 = vpop.permute.xlu2 %472 }
 0x12c   : > { %1216 = vmatpush.xpose.msk.msra.mxu1 %vm474_vm2, %v473_v10 }
 0x12f   : > { %1217 = vmatmul.msk.f32.vlgmr.msra.gmra.mxu1 %vm474_vm2, %v463_v9 }
 0x143   : > { %v471_v11 = vpop.permute.xlu1 %470 }
 0x144   : > { %v467_v12 = vpop.permute.xlu0 %466  ;;  %551 = vrot.lane.b32.xlu0 %v471_v11, %s1580_s5 }
 0x145   : > { %499 = vrot.lane.b32.xlu1 %v467_v12, %s1580_s5  ;;  %v1356_v13 = vpack.i.bf16 %v467_v12, %v463_v9 }
 0x14c   : > { %v469_v14 = vpop.permute.xlu0 %468  ;;  %1357 = vrot.lane.b32.xlu0 %v1356_v13, %s1584_s22 }
 0x14d   : > { %525 = vrot.lane.b32.xlu2 %v469_v14, %s1580_s5  ;;  %v1361_v23 = vpack.i.bf16 %v471_v11, %v469_v14 }
 0x1a7   : > { %v526_v15 = vpop.permute.xlu2 %525 }
 0x1a8   : > { %1220 = vmatpush.xpose.msk.msrb.mxu0 %vm474_vm2, %v526_v15 }
 0x1ab   : > { %1221 = vmatmul.msk.f32.vlgmr.msrb.gmra.mxu0 %vm474_vm2, %v469_v14 }
 0x1ac   : > { %v496_v16 = vpop.f32.mrf.mxu1 }
 0x1ad   : > { %v577_v17 = vsel %vm474_vm2, %v496_v16, -inf }
 0x1ae   : > { %578 = vmax.xlane.f32.xlu1 %v577_v17 }
 0x1b6   : > { %v552_v18 = vpop.permute.xlu0 %551 }
 0x1b7   : > { %v500_v19 = vpop.permute.xlu1 %499  ;;  %1222 = vmatpush.xpose.msk.msrb.mxu1 %vm474_vm2, %v552_v18 }
 0x1b8   : > { %1218 = vmatpush.xpose.msk.msra.mxu2 %vm474_vm2, %v500_v19 }
 0x1ba   : > { %1223 = vmatmul.msk.f32.vlgmr.msrb.gmra.mxu1 %vm474_vm2, %v471_v11 }
 0x1bb   : > { %1219 = vmatmul.msk.f32.vlgmr.msra.gmra.mxu2 %vm474_vm2, %v467_v12 }
 0x1be   : > { %v1358_v20 = vpop.permute.xlu0 %1357 }
 0x1bf   : > { %v1359_v21 = vunpack.i.l.bf16 %v1358_v20  ;;  %v1360_v22 = vunpack.i.h.bf16 %v1358_v20  ;;  %v828_v20 = vperm.slane %v1825_v6, 1 }
 0x1c1   : > { %634 = vmatpush.msrb.mxu2 %v1359_v21  ;;  %660 = vmatpush.msra.mxu3 %v1360_v22 }
 0x1c3   : > { %747 = vmatpush.msra.mxu2 %v725_v43  ;;  %770 = vmatpush.msrb.mxu3 %v726_v59  ;;  %v898_v43 = vld [vmem:[%s1815_s9 + $0x28] sm:$0xff] }
 0x1c7   : > { %1362 = vrot.lane.b32.xlu1 %v1361_v23, %s1584_s22 }
 0x221   : > { %v579_v24 = vpop.xlane.xlu1 %578 }
 0x222   : > { %v589_v25 = vsub.f32 %v496_v16, %v579_v24 }
 0x224   : > { %v593_v26 = vmul.f32 1.442695, %v589_v25 }
 0x226   : > { %1366 = vpow2.f32 %v593_v26  ;;  %v1585_v26 = vmov 32.0  }
 0x228   : > { %v548_v27 = vpop.f32.mrf.mxu0 }
 0x229   : > { %v583_v28 = vsel %vm474_vm2, %v548_v27, -inf }
 0x22a   : > { %584 = vmax.xlane.f32.xlu0 %v583_v28 }
 0x22c   : > { %v1367_v29 = vpop.eup %1366 }
 0x22d   : > { %1224 = vmatmul.msk.f32.vlgmr.msrb.gmra.mxu2 %vm474_vm2, %v1367_v29  ;;  %v601_v37 = vsel %vm474_vm2, %v1367_v29, 0.0 }
 0x237   : > { %v574_v35 = vpop.f32.mrf.mxu1 }
 0x238   : > { %v586_v36 = vsel %vm474_vm2, %v574_v35, -inf }
 0x239   : > { %v1363_v30 = vpop.permute.xlu1 %1362 }
 0x23a   : > { %v1365_v31 = vunpack.i.h.bf16 %v1363_v30  ;;  %v1364_v32 = vunpack.i.l.bf16 %v1363_v30 }
 0x23c   : > { %686 = vmatpush.msra.mxu0 %v1364_v32  ;;  %712 = vmatpush.msra.mxu1 %v1365_v31 }
 0x23e   : > { %v522_v33 = vpop.f32.mrf.mxu2  ;;  %793 = vmatpush.msrb.mxu0 %v727_v58  ;;  %816 = vmatpush.msrb.mxu1 %v728_v61  ;;  %v862_v58 = vperm.slane %v1825_v6, 5  ;;  %v895_v61 = vld [vmem:[%s1815_s9 + $0x10] sm:$0xff] }
 0x23f   : > { %v580_v34 = vsel %vm474_vm2, %v522_v33, -inf }
 0x240   : > { %581 = vmax.xlane.f32.xlu2 %v580_v34 }
 0x248   : > { %587 = vmax.xlane.f32.xlu2 %v586_v36 }
 0x250   : > { %602 = vadd.xlane.f32.xlu2 %v601_v37  ;;  %v867_v37 = vld [vmem:[%s1810_s21 + $0x18] sm:$0xff] }
 0x251   : > { %884 = vmatpush.msrb.mxu2 %v867_v37 }
 0x29d   : > { %v585_v38 = vpop.xlane.xlu0 %584 }
 0x29e   : > { %v591_v39 = vsub.f32 %v548_v27, %v585_v38  ;;  %v866_v38 = vld [vmem:[%s1810_s21 + $0x10] sm:$0xff] }
 0x29f   : > { %885 = vmatpush.msrb.mxu2 %v866_v38 }
 0x2a0   : > { %v597_v40 = vmul.f32 1.442695, %v591_v39  ;;  %v865_v39 = vld [vmem:[%s1810_s21 + $0x8] sm:$0xff] }
 0x2a1   : > { %886 = vmatpush.msrb.mxu2 %v865_v39 }
 0x2a2   : > { %1368 = vpow2.f32 %v597_v40  ;;  %v864_v40 = vld [vmem:[%s1810_s21] sm:$0xff] }
 0x2a3   : > { %887 = vmatpush.msrb.mxu2 %v864_v40 }
 0x2a8   : > { %v1369_v41 = vpop.eup %1368 }
 0x2a9   : > { %1226 = vmatmul.msk.f32.vlgmr.msra.gmra.mxu0 %vm474_vm2, %v1369_v41  ;;  %v607_v42 = vsel %vm474_vm2, %v1369_v41, 0.0  ;;  %v900_v41 = vld [vmem:[%s1815_s9 + $0x38] sm:$0xff] }
 0x2aa   : > { %608 = vadd.xlane.f32.xlu0 %v607_v42  ;;  %v899_v42 = vld [vmem:[%s1815_s9 + $0x30] sm:$0xff] }
 0x2b0   : > { %v636_v56 = vpop.f32.mrf.mxu2 }
 0x2b3   : > { %v582_v44 = vpop.xlane.xlu2 %581 }
 0x2b4   : > { %v590_v45 = vsub.f32 %v522_v33, %v582_v44 }
 0x2b6   : > { %v595_v46 = vmul.f32 1.442695, %v590_v45 }
 0x2b8   : > { %1370 = vpow2.f32 %v595_v46  ;;  %v897_v46 = vld [vmem:[%s1815_s9 + $0x20] sm:$0xff] }
 0x2bb   : > { %v588_v47 = vpop.xlane.xlu2 %587 }
 0x2bc   : > { %v592_v48 = vsub.f32 %v574_v35, %v588_v47 }
 0x2be   : > { %v1371_v49 = vpop.eup %1370  ;;  %v599_v50 = vmul.f32 1.442695, %v592_v48  ;;  %v896_v48 = vld [vmem:[%s1815_s9 + $0x18] sm:$0xff] }
 0x2bf   : > { %1225 = vmatmul.msk.f32.vlgmr.msra.gmra.mxu3 %vm474_vm2, %v1371_v49  ;;  %v604_v51 = vsel %vm474_vm2, %v1371_v49, 0.0 }
 0x2c0   : > { %1372 = vpow2.f32 %v599_v50  ;;  %605 = vadd.xlane.f32.xlu2 %v604_v51  ;;  %914 = vmatpush.msra.mxu3 %v900_v41 }
 0x2c2   : > { %915 = vmatpush.msra.mxu3 %v899_v42 }
 0x2c3   : > { %v603_v52 = vpop.xlane.xlu2 %602 }
 0x2c4   : > { %1374 = vrcp.f32 %v603_v52  ;;  %916 = vmatpush.msra.mxu3 %v898_v43 }
 0x2c6   : > { %v1373_v53 = vpop.eup %1372  ;;  %917 = vmatpush.msra.mxu3 %v897_v46 }
 0x2c7   : > { %1227 = vmatmul.msk.f32.vlgmr.msra.gmra.mxu1 %vm474_vm2, %v1373_v53  ;;  %v610_v54 = vsel %vm474_vm2, %v1373_v53, 0.0 }
 0x2c8   : > { %611 = vadd.xlane.f32.xlu2 %v610_v54  ;;  %918 = vmatpush.msra.mxu3 %v896_v48 }
 0x2ca   : > { %v1375_v55 = vpop.eup %1374  ;;  %919 = vmatpush.msra.mxu3 %v895_v61 }
 0x2cb   : > { %v721_v57 = vmul.f32 %v1375_v55, %v636_v56  ;;  %v860_v55 = vperm.slane %v1825_v6, 4 }
 0x2cd   : > { %1228 = vmatmul.msk.f32.vlgmr.msra.gmra.mxu2 %vm474_vm2, %v721_v57 }
 0x31d   : > { %v609_v60 = vpop.xlane.xlu0 %608 }
 0x31e   : > { %1376 = vrcp.f32 %v609_v60 }
 0x324   : > { %v1377_v62 = vpop.eup %1376 }
 0x326   : > { %v688_v63 = vpop.f32.mrf.mxu0 }
 0x327   : > { %v723_v0 = vmul.f32 %v1377_v62, %v688_v63  ;;  %v894_v62 = vld [vmem:[%s1815_s9 + $0x8] sm:$0xff]  ;;  %v893_v63 = vld [vmem:[%s1815_s9] sm:$0xff] }
 0x328   : > { %920 = vmatpush.msra.mxu3 %v894_v62 }
 0x329   : > { %1230 = vmatmul.msk.f32.vlgmr.msrb.gmra.mxu0 %vm474_vm2, %v723_v0  ;;  %v868_v0 = vperm.slane %v1825_v6, 2 }
 0x32a   : > { %921 = vmatpush.msra.mxu3 %v893_v63 }
 0x333   : > { %v606_v1 = vpop.xlane.xlu2 %605 }
 0x334   : > { %1378 = vrcp.f32 %v606_v1 }
 0x33a   : > { %v1379_v3 = vpop.eup %1378 }
 0x33b   : > { %v612_v2 = vpop.xlane.xlu2 %611 }
 0x33c   : > { %1380 = vrcp.f32 %v612_v2 }
 0x33d   : > { %1382 = vrcp.f32 %v1585_v26 }
 0x342   : > { %v662_v4 = vpop.f32.mrf.mxu3  ;;  %v1381_v8 = vpop.eup %1380 }
 0x343   : > { %v722_v7 = vmul.f32 %v1379_v3, %v662_v4  ;;  %v1383_v27 = vpop.eup %1382  ;;  %v901_v4 = vperm.slane %v1825_v6, 3 }
 0x344   : > { %v714_v9 = vpop.f32.mrf.mxu1  ;;  %v835_v28 = vmul.f32 32.0, %v1383_v27  ;;  %vm839_vm3 = vweird.f32 %v1383_v27 }
 0x345   : > { %v724_v10 = vmul.f32 %v1381_v8, %v714_v9  ;;  %1229 = vmatmul.msk.f32.vlgmr.msrb.gmra.mxu3 %vm474_vm2, %v722_v7 }
 0x346   : > { %v836_v29 = vsub.f32 1.0, %v835_v28 }
 0x347   : > { %1231 = vmatmul.msk.f32.vlgmr.msrb.gmra.mxu1 %vm474_vm2, %v724_v10 }
 0x348   : > { %v837_v30 = vmul.f32 %v1383_v27, %v836_v29 }
 0x34a   : > { %v838_v31 = vadd.f32 %v1383_v27, %v837_v30 }
 0x34c   : > { %v1863_v32 = vsel %vm839_vm3, %v1383_v27, %v838_v31  ;;  %v951_v27 = vperm.slane %v1825_v6, 7 }
 0x350   : > { %v749_v11 = vpop.f32.mrf.mxu2 }
 0x351   : > { %v821_v14 = vsel %vm441_vm1, %v749_v11, 0.0 }
 0x3a6   : > { %v795_v12 = vpop.f32.mrf.mxu0 }
 0x3a7   : > { %v824_v18 = vsel %vm441_vm1, %v795_v12, 0.0 }
 0x3c4   : > { %v818_v16 = vpop.f32.mrf.mxu1 }
 0x3c5   : > { %v826_v21 = vsel %vm441_vm1, %v818_v16, 0.0 }
 0x3c8   : > { %v772_v13 = vpop.f32.mrf.mxu3 }
 0x3c9   : > { %v822_v15 = vsel %vm441_vm1, %v772_v13, 0.0 }
 0x3ca   : > { %v823_v17 = vadd.f32 %v822_v15, %v821_v14 }
 0x3cc   : > { %v825_v19 = vadd.f32 %v824_v18, %v823_v17 }
 0x3ce   : > { %v827_v22 = vadd.f32 %v826_v21, %v825_v19 }
 0x3d0   : > { %v829_v23 = vadd.f32 %v828_v20, %v827_v22 }
 0x3d2   : > { %v830_v24 = vadd.f32 %v829_v23, %v1821_v5 }
 0x3d4   : > { %v831_v25 = vsel %vm441_vm1, %v830_v24, 0.0 }
 0x3d5   : > { %832 = vadd.xlane.f32.xlu0 %v831_v25  ;;  %v949_v25 = vperm.slane %v1825_v6, 6 }
 0x448   : > { %v833_v5 = vpop.xlane.xlu0 %832 }
 0x449   : > { %v841_v33 = vmul.f32 %v1863_v32, %v833_v5 }
 0x44b   : > { %v842_v34 = vsub.f32 %v830_v24, %v841_v33 }
 0x44d   : > { %v843_v35 = vmul.f32 %v842_v34, %v842_v34 }
 0x44f   : > { %v844_v36 = vsel %vm441_vm1, %v843_v35, 0.0 }
 0x450   : > { %845 = vadd.xlane.f32.xlu1 %v844_v36 }
 0x4c3   : > { %v846_v44 = vpop.xlane.xlu1 %845 }
 0x4c4   : > { %v847_v45 = vmul.f32 %v846_v44, %v1863_v32 }
 0x4c6   : > { %v848_v47 = vadd.f32 1e-06, %v847_v45 }
 0x4c8   : > { %1384 = vrsqrt.f32 %v848_v47  ;;  %vm855_vm5 = vweird.f32 %v848_v47 }
 0x4ce   : > { %v1385_v49 = vpop.eup %1384 }
 0x4cf   : > { %v850_v50 = vmul.f32 %v1385_v49, %v848_v47  ;;  %vm856_vm4 = vweird.f32 %v1385_v49 }
 0x4d0   : > { %vm857_vm6 = vmor %vm855_vm5, %vm856_vm4 }
 0x4d1   : > { %v851_v51 = vmul.f32 %v1385_v49, %v850_v50 }
 0x4d3   : > { %v852_v52 = vmul.f32 0.5, %v851_v51 }
 0x4d5   : > { %v853_v53 = vsub.f32 1.5, %v852_v52 }
 0x4d7   : > { %v854_v54 = vmul.f32 %v1385_v49, %v853_v53 }
 0x4d9   : > { %v858_v56 = vsel %vm857_vm6, %v1385_v49, %v854_v54 }
 0x4da   : > { %v859_v57 = vmul.f32 %v858_v56, %v842_v34 }
 0x4dc   : > { %v861_v59 = vmul.f32 %v860_v55, %v859_v57 }
 0x4de   : > { %v863_v60 = vadd.f32 %v862_v58, %v861_v59 }
 0x4e0   : > { %1232 = vmatmul.msk.f32.vlgmr.msrb.gmra.mxu2 %vm441_vm1, %v863_v60 }
 0x563   : > { %v889_v1 = vpop.f32.mrf.mxu2 }
 0x564   : > { %v890_v2 = vadd.f32 %v889_v1, %v868_v0 }
 0x566   : > { %v892_v3 = vmax.f32 %v890_v2, 0.0 }
 0x568   : > { %1233 = vmatmul.msk.f32.vlgmr.msra.gmra.mxu3 %vm902_vm7, %v892_v3 }
 0x5eb   : > { %v923_v7 = vpop.f32.mrf.mxu3 }
 0x5ec   : > { %v924_v8 = vadd.f32 %v923_v7, %v901_v4 }
 0x5ee   : > { %v926_v9 = vadd.f32 %v924_v8, %v863_v60 }
 0x5f0   : > { %v927_v10 = vsel %vm441_vm1, %v926_v9, 0.0 }
 0x5f1   : > { %928 = vadd.xlane.f32.xlu2 %v927_v10 }
 0x664   : > { %v929_v11 = vpop.xlane.xlu2 %928 }
 0x665   : > { %v930_v12 = vmul.f32 %v929_v11, %v1863_v32 }
 0x667   : > { %v931_v13 = vsub.f32 %v926_v9, %v930_v12 }
 0x669   : > { %v932_v14 = vmul.f32 %v931_v13, %v931_v13 }
 0x66b   : > { %v933_v15 = vsel %vm441_vm1, %v932_v14, 0.0 }
 0x66c   : > { %934 = vadd.xlane.f32.xlu0 %v933_v15 }
 0x6df   : > { %v935_v16 = vpop.xlane.xlu0 %934 }
 0x6e0   : > { %v936_v17 = vmul.f32 %v935_v16, %v1863_v32 }
 0x6e2   : > { %v937_v18 = vadd.f32 1e-06, %v936_v17 }
 0x6e4   : > { %1386 = vrsqrt.f32 %v937_v18  ;;  %vm944_vm9 = vweird.f32 %v937_v18 }
 0x6ea   : > { %v1387_v19 = vpop.eup %1386 }
 0x6eb   : > { %v939_v20 = vmul.f32 %v1387_v19, %v937_v18  ;;  %vm945_vm8 = vweird.f32 %v1387_v19 }
 0x6ec   : > { %vm946_vm10 = vmor %vm944_vm9, %vm945_vm8 }
 0x6ed   : > { %v940_v21 = vmul.f32 %v1387_v19, %v939_v20 }
 0x6ef   : > { %v941_v22 = vmul.f32 0.5, %v940_v21 }
 0x6f1   : > { %v942_v23 = vsub.f32 1.5, %v941_v22 }
 0x6f3   : > { %v943_v24 = vmul.f32 %v1387_v19, %v942_v23 }
 0x6f5   : > { %v947_v26 = vsel %vm946_vm10, %v1387_v19, %v943_v24 }
 0x6f6   : > { %v948_v28 = vmul.f32 %v947_v26, %v931_v13 }
 0x6f8   : > { %v950_v29 = vmul.f32 %v949_v25, %v948_v28  ;;  %957 = sbr.rel (%p1234_p0) target bundleno = 2352 (0x930), region = 64 }
 0x6fa   : > { %v952_v30 = vadd.f32 %v951_v27, %v950_v29 }
 0x6fc   : > { %953 = vst.msk [vmem:[#allocation2] sm:$0xff] %vm441_vm1, %v952_v30 }
 0x6fd   : > { %v959_v31 = vsel %vm441_vm1, %v952_v30, 0.0  ;;  %v958_v44 = vld [vmem:[%s2001_s24] sm:$0xf]  ;;  %v1023_v21 = vld [vmem:[%s1783_s8] sm:$0xff] }
 0x6fe   : > { %960 = vadd.xlane.f32.xlu0 %v959_v31  ;;  %v981_v46 = vperm.slane %v958_v44, 0  ;;  %v983_v49 = vperm.slane %v958_v44, 1  ;;  %v1019_v16 = vperm.slane %v958_v44, 2  ;;  %v1021_v18 = vperm.slane %v958_v44, 3 }
 0x771   : > { %v961_v5 = vpop.xlane.xlu0 %960 }
 0x772   : > { %v962_v33 = vmul.f32 %v961_v5, %v1863_v32 }
 0x774   : > { %v963_v34 = vsub.f32 %v952_v30, %v962_v33 }
 0x776   : > { %v964_v35 = vmul.f32 %v963_v34, %v963_v34 }
 0x778   : > { %v965_v36 = vsel %vm441_vm1, %v964_v35, 0.0 }
 0x779   : > { %966 = vadd.xlane.f32.xlu0 %v965_v36 }
 0x7ec   : > { %v967_v6 = vpop.xlane.xlu0 %966 }
 0x7ed   : > { %v968_v37 = vmul.f32 %v967_v6, %v1863_v32 }
 0x7ef   : > { %v969_v38 = vadd.f32 1e-06, %v968_v37 }
 0x7f1   : > { %1388 = vrsqrt.f32 %v969_v38  ;;  %vm976_vm12 = vweird.f32 %v969_v38 }
 0x7f7   : > { %v1389_v39 = vpop.eup %1388 }
 0x7f8   : > { %v971_v40 = vmul.f32 %v1389_v39, %v969_v38  ;;  %vm977_vm11 = vweird.f32 %v1389_v39 }
 0x7f9   : > { %vm978_vm13 = vmor %vm976_vm12, %vm977_vm11 }
 0x7fa   : > { %v972_v41 = vmul.f32 %v1389_v39, %v971_v40 }
 0x7fc   : > { %v973_v42 = vmul.f32 0.5, %v972_v41 }
 0x7fe   : > { %v974_v43 = vsub.f32 1.5, %v973_v42 }
 0x800   : > { %v975_v45 = vmul.f32 %v1389_v39, %v974_v43 }
 0x802   : > { %v979_v47 = vsel %vm978_vm13, %v1389_v39, %v975_v45 }
 0x803   : > { %v980_v48 = vmul.f32 %v979_v47, %v963_v34 }
 0x805   : > { %v982_v32 = vmul.f32 %v981_v46, %v980_v48 }
 0x807   : > { %v984_v50 = vadd.f32 %v983_v49, %v982_v32 }
 0x809   : > { %v985_v51 = vsel %vm441_vm1, %v984_v50, 0.0 }
 0x80a   : > { %986 = vadd.xlane.f32.xlu1 %v985_v51 }
 0x87d   : > { %v987_v52 = vpop.xlane.xlu1 %986 }
 0x87e   : > { %v988_v53 = vrot.slane %v987_v52, 4 }
 0x880   : > { %v989_v54 = vadd.f32 %v988_v53, %v987_v52 }
 0x882   : > { %v990_v55 = vrot.slane %v989_v54, 2 }
 0x884   : > { %v991_v56 = vadd.f32 %v990_v55, %v989_v54 }
 0x886   : > { %v992_v57 = vrot.slane %v991_v56, 1 }
 0x888   : > { %v993_v58 = vadd.f32 %v992_v57, %v991_v56 }
 0x88a   : > { %v994_v59 = vmul.f32 0.00390625, %v993_v58 }
 0x88c   : > { %v995_v60 = vsub.f32 %v984_v50, %v994_v59 }
 0x88e   : > { %v996_v61 = vmul.f32 %v995_v60, %v995_v60 }
 0x890   : > { %v997_v62 = vsel %vm441_vm1, %v996_v61, 0.0 }
 0x891   : > { %998 = vadd.xlane.f32.xlu1 %v997_v62 }
 0x904   : > { %v999_v63 = vpop.xlane.xlu1 %998 }
 0x905   : > { %v1000_v0 = vrot.slane %v999_v63, 4 }
 0x907   : > { %v1001_v1 = vadd.f32 %v1000_v0, %v999_v63 }
 0x909   : > { %v1002_v2 = vrot.slane %v1001_v1, 2 }
 0x90b   : > { %v1003_v3 = vadd.f32 %v1002_v2, %v1001_v1 }
 0x90d   : > { %v1004_v4 = vrot.slane %v1003_v3, 1 }
 0x90f   : > { %v1005_v7 = vadd.f32 %v1004_v4, %v1003_v3 }
 0x911   : > { %v1006_v8 = vmul.f32 0.00390625, %v1005_v7 }
 0x913   : > { %v1007_v9 = vadd.f32 1.1920929e-07, %v1006_v8 }
 0x915   : > { %1390 = vrsqrt.f32 %v1007_v9  ;;  %vm1014_vm15 = vweird.f32 %v1007_v9 }
 0x91b   : > { %v1391_v10 = vpop.eup %1390 }
 0x91c   : > { %v1009_v11 = vmul.f32 %v1391_v10, %v1007_v9  ;;  %vm1015_vm14 = vweird.f32 %v1391_v10 }
 0x91d   : > { %vm1016_vm0 = vmor %vm1014_vm15, %vm1015_vm14 }
 0x91e   : > { %v1010_v12 = vmul.f32 %v1391_v10, %v1009_v11 }
 0x920   : > { %v1011_v13 = vmul.f32 0.5, %v1010_v12 }
 0x922   : > { %v1012_v14 = vsub.f32 1.5, %v1011_v13 }
 0x924   : > { %v1013_v15 = vmul.f32 %v1391_v10, %v1012_v14 }
 0x926   : > { %v1017_v17 = vsel %vm1016_vm0, %v1391_v10, %v1013_v15 }
 0x927   : > { %v1018_v19 = vmul.f32 %v1017_v17, %v995_v60 }
 0x929   : > { %v1020_v20 = vmul.f32 %v1019_v16, %v1018_v19 }
 0x92b   : > { %v1022_v22 = vadd.f32 %v1021_v18, %v1020_v20 }
 0x92d   : > { %v1024_v23 = vadd.f32 %v1023_v21, %v1022_v22 }
 0x92f   : > { %1025 = vst.msk [vmem:[%s1817_s14] sm:$0xff] %vm441_vm1, %v1024_v23 }
 0x930 PF: > { %s2002_s18 = sld [smem:[#allocation13_spill]]  ;;  %s1039_s6 = sshll.u32 %s1817_s14, 4  ;;  %s1040_s6 = int_to_ptr.vmem [resolvable:$true] %s1039_s6 }
 0x931   : > { %s2004_s13 = sld [smem:[#allocation24_spill]]  ;;  %s1027_s19 = scalar_lea.sflag [#allocation5], %s1779_s27 }
 0x936   : > { %s1236_s16 = sshll.u32 %s2002_s18, 3 }
 0x937   : > { %s1037_s4 = scalar_lea.hbm %s2004_s13, %s1236_s16  ;;  %s1472_s0 = scalar_lea.hbm %s2004_s13, 16 }
 0x938   : > { %s1041_s21 = sshll.u32 %s1037_s4, 4  ;;  %s1042_s21 = int_to_ptr.hbm [resolvable:$true] %s1041_s21 }
 0x939   : > { %s1466_s8 = sshra.s32 %s1042_s21, 4  ;;  %s1467_s8 = int_to_ptr.hbm [resolvable:$true] %s1466_s8 }
 0x93a   : > { %s1468_s5 = scalar_lea.hbm %s1467_s8, 8  ;;  %p1473_p7 = scmp.lt.s32.totalorder %s1467_s8, %s2004_s13 }
 0x93b   : > { %p1469_p2 = scmp.ne.s32.totalorder %s1467_s8, %s1468_s5  ;;  %p1474_p11 = scmp.lt.s32.totalorder %s1472_s0, %s1468_s5 }
 0x93d   : > { %p1470_p5 = pnand %p1469_p2, %p1706_p8  ;;  %p1475_p12 = por %p1474_p11, %p1473_p7 }
 0x93f   : > { %p1471_p4 = pneg %p1470_p5 }
 0x941   : > { %p1476_p13 = pnand %p1475_p12, %p1471_p4 }
 0x943   : > { %1479 = shalt.err (!%p1476_p13)
}
 0x944   : > { %1247 = dma.vmem_to_hbm [thread:$0]  (%p1706_p8), %s1040_s6, 128, %s1042_s21, %s1027_s19  }
 0x945 PF: > { %s2005_s27 = sld [smem:[#allocation12_spill]]  ;;  %p1261_p1 = scmp.ge.s32.totalorder %s1578_s11, 2 }
 0x947   : > { %p1257_p3 = pnand %p1261_p1, %p1710_p9 }
 0x949   : > { %p1258_p10 = pneg %p1257_p3 }
 0x94b   : > { %s1053_s9 = sand.u32 1, %s2005_s27  }
 0x94c   : > { %s1054_s24 = scalar_lea.sflag [#allocation5], %s1053_s9 }
 0x94d   : > { %1533 = dma.done.wait (%p1258_p10), %s1054_s24, 128  }
 0x94e   : > { %1535 = vsyncadd (%p1258_p10), %s1054_s24, 4294967168  ;;  %s26_s11 = sadd.s32 1, %s1578_s11   ;;  %s2007_s30 = sld [smem:[#allocation14_spill]] }
 0x94f   : > { %p23_p6 = scmp.ge.s32.totalorder %s26_s11, 6   ;;  %s2008_s8 = sld [smem:[#allocation15_spill]] }
 0x950   : > { %s2009_s9 = sld [smem:[#allocation18_spill]]  ;;  %s2011_s24 = smov %s1542_s25 }
 0x951   : > { %s2010_s10 = sld [smem:[#allocation19_spill]]  ;;  %s2012_s25 = smov %s1546_s26 }
 0x952   : > { %s2013_s26 = smov %s1759_s12  ;;  %s2014_s27 = smov %s1554_s28 }
 0x953   : > { %s2015_s28 = smov %s1558_s29  ;;  %s2016_s29 = smov %s1767_s20 }
 0x954   :  { %25 = sbr.rel (!%p23_p6) target bundleno = 17 (0x11), region = 126 }
 0x959   :  { %1060 = vsyncpa [#allocation4], 1 }
 0x95a   :  { %1062 = vsyncpa [#allocation4 + $0x1], 1 }
 0x95b   :  { %1063 = vsyncpa [#allocation7], 1 }
 0x95c   :  { %1065 = vsyncpa [#allocation7 + $0x1], 1 }
 0x95d   :  { %1066 = vsyncpa [#allocation5], 1 }
 0x95e   :  { %1068 = vsyncpa [#allocation5 + $0x1], 1 }

</bundles_post_ra>
